<compile_context>
chip_gen: v6e
topology: v6e:2x2x1
jax: 0.10.0
libtpu: 0.0.40
codegen_flags: <defaults>
</compile_context>

<pallas_src>
import functools

import numpy as np
import jax
import jax.numpy as jnp
from jax.experimental import pallas as pl
from jax.experimental.pallas import tpu as pltpu


def make_region_coord_grid(K):
    # Matches numpy meshgrid with default 'xy' indexing used in the PyTorch module.
    x = jnp.linspace(0.0, 1.0, K)
    y = jnp.linspace(0.0, 1.0, K)
    pos_x, pos_y = jnp.meshgrid(x, y)          # each (K, K)
    return pos_x[None, ...], pos_y[None, ...]  # (1, K, K)


def spatial_integral_kernel(inv_temperature, F,
                            x_ref, posxy_ref, rc_ref, eiej_ref, ri_ref,
                            jt_ref, pcol_ref, out_ref):
    # (TB, K*K) lane-dense logits, cast to f32 in-register.
    logits = x_ref[...].astype(jnp.float32) * inv_temperature

    # Softmax numerator only; normalization deferred past the MXU dot
    # (exact: the dot is linear in `e`), so no (TB, K*K) `sm` is materialized.
    m = jnp.max(logits, axis=-1, keepdims=True)
    e = jnp.exp(logits - m)
    denom = jnp.sum(e, axis=-1, keepdims=True)                           # (TB, 1)
    cxy = jnp.dot(e, posxy_ref[...],
                  preferred_element_type=jnp.float32) * pl.reciprocal(denom)

    # Sigmoid (EUP logistic), then row/col sums (with /K folded in) via one MXU
    # dot against the constant indicator matrix -> vcat = [row_sum | col_sum].
    sig = jax.nn.sigmoid(logits)                                         # (TB, K*K)
    vcat = jnp.dot(sig, rc_ref[...], preferred_element_type=jnp.float32)  # (TB, 2K)

    # ---- Lane-dense rank-based sorted pooling (both pools in one pass) ----
    # Pairwise grid flattened to F = 2*K*K lanes, m = g*K*K + i*K + j with
    # g = 0 (row sums / pool_w) and g = 1 (col sums / pool_h).
    # vi[:, m] = vcat[:, g*K+i], vj[:, m] = vcat[:, g*K+j] via one dot against
    # the fused expansion constant [Ei | Ej].
    ve = jnp.dot(vcat, eiej_ref[...], preferred_element_type=jnp.float32)  # (TB, 2F)
    vi = ve[:, :F]
    vj = ve[:, F:]

    jt = jt_ref[...]                 # (2, F): row 0 = rank index j, row 1 = (j < i)
    jgrid = jt[0:1, :]
    tie = jt[1:2, :] > 0.5

    # Stable ascending rank of each element within its group (exact small ints).
    less = ((vj < vi) | ((vj == vi) & tie)).astype(jnp.float32)          # (TB, F)
    rank = jnp.dot(less, ri_ref[...], preferred_element_type=jnp.float32)  # (TB, 2K)
    rank_exp = jnp.dot(rank, eiej_ref[:, :F],
                       preferred_element_type=jnp.float32)               # (TB, F)
    onehot = (rank_exp == jgrid).astype(jnp.float32)                     # (TB, F)

    # wh[:, g] = sum_i v_g[:, i] * pool_g[rank_g[:, i]]  ==  sort(v_g) @ pool_g
    wh = jnp.dot(vi * onehot, pcol_ref[...],
                 preferred_element_type=jnp.float32)                     # (TB, 2)

    out_ref[...] = jnp.clip(jnp.concatenate([cxy, wh], axis=1), 0.0, 1.0)


def _pick_batch_tile(bs, block_rows):
    if bs <= 8:
        return bs                              # block == full dim is always legal
    tb = max(8, -(-bs // 4))                   # aim for >= 4 grid steps (v7x megacore)
    tb = ((tb + 7) // 8) * 8                   # sublane-aligned
    return min(tb, block_rows)


def spatial_integral(x, pos_x, pos_y, pool_w, pool_h, temperature=1.0,
                     block_rows=256, input_dtype=None):
    bs, K, _ = x.shape
    P = K * K
    F = 2 * P

    # Lane-dense flattening of the spatial dims (row-major, matches view(bs, -1)).
    x2 = x.reshape(bs, P)
    if input_dtype is not None:
        x2 = x2.astype(input_dtype)            # e.g. jnp.bfloat16 streaming on v5e

    # ---- constants (built once per trace) ----
    posxy = jnp.concatenate([jnp.reshape(pos_x, (P, 1)),
                             jnp.reshape(pos_y, (P, 1))],
                            axis=1).astype(jnp.float32)                  # (P, 2)

    p = np.arange(P)
    k = np.arange(K)
    R = (p[:, None] // K == k[None, :]).astype(np.float32)   # row sums (torch dim=2)
    C = (p[:, None] % K == k[None, :]).astype(np.float32)    # col sums (torch dim=1)
    rc = jnp.asarray(np.concatenate([R, C], axis=1) * (1.0 / K))         # (P, 2K)

    # Pairwise-flatten index decomposition: m = g*P + i*K + j.
    mm = np.arange(F)
    g = mm // P
    i = (mm % P) // K
    j = mm % K
    col = np.arange(2 * K)
    ri_np = ((g * K + i)[:, None] == col[None, :]).astype(np.float32)    # (F, 2K) == Ei^T
    ej_np = ((g * K + j)[:, None] == col[None, :]).astype(np.float32)    # (F, 2K) == Ej^T
    eiej = jnp.asarray(np.concatenate([ri_np.T, ej_np.T], axis=1))       # (2K, 2F)
    ri = jnp.asarray(ri_np)                                              # (F, 2K)
    jt = jnp.asarray(np.stack([j.astype(np.float32),
                               (j < i).astype(np.float32)], axis=0))     # (2, F)

    # Per-group pooling weights on the flattened pairwise grid:
    # pcol[m, g'] = pool_{g'}[j] if g == g' else 0   (learnable -> built with jnp).
    pw = jnp.reshape(pool_w, (K,)).astype(jnp.float32)
    ph = jnp.reshape(pool_h, (K,)).astype(jnp.float32)
    gsel = np.zeros((F, 2), np.float32)
    gsel[:P, 0] = 1.0
    gsel[P:, 1] = 1.0
    pool_grid = jnp.concatenate([pw[j[:P]], ph[j[P:]]], axis=0)          # (F,)
    pcol = jnp.asarray(gsel) * pool_grid[:, None]                        # (F, 2)

    TB = _pick_batch_tile(bs, block_rows)
    grid = (pl.cdiv(bs, TB),)

    kernel = functools.partial(spatial_integral_kernel,
                               float(1.0 / temperature), F)
    # TODO(synk): output stays (TB, 4) (narrow store); a (4, TB) batch-in-lanes
    # store would need extra transposes for a small, output-bytes-limited win.
    return pl.pallas_call(
        kernel,
        out_shape=jax.ShapeDtypeStruct((bs, 4), jnp.float32),
        grid=grid,
        in_specs=[
            pl.BlockSpec((TB, P), lambda b: (b, 0)),         # logits tile
            pl.BlockSpec((P, 2), lambda b: (0, 0)),          # [pos_x | pos_y]
            pl.BlockSpec((P, 2 * K), lambda b: (0, 0)),      # row/col indicators (/K folded)
            pl.BlockSpec((2 * K, 2 * F), lambda b: (0, 0)),  # fused [Ei | Ej] expansion
            pl.BlockSpec((F, 2 * K), lambda b: (0, 0)),      # rank-count indicator
            pl.BlockSpec((2, F), lambda b: (0, 0)),          # [j grid ; tie mask]
            pl.BlockSpec((F, 2), lambda b: (0, 0)),          # per-group pool weights
        ],
        out_specs=pl.BlockSpec((TB, 4), lambda b: (b, 0)),
        compiler_params=pltpu.CompilerParams(
            dimension_semantics=("parallel",),
            vmem_limit_bytes=32 * 1024 * 1024),
    )(x2, posxy, rc, eiej, ri, jt, pcol)


def spatial_integral_reference(x, pos_x, pos_y, pool_w, pool_h, temperature=1.0):
    """Pure-JAX reference mirroring the PyTorch forward exactly."""
    bs = x.shape[0]
    K = x.shape[-1]
    logits = x.reshape(bs, -1).astype(jnp.float32) / temperature
    sm = jax.nn.softmax(logits, axis=-1)
    c_x = jnp.sum(pos_x.reshape(1, -1) * sm, axis=1, keepdims=True)
    c_y = jnp.sum(pos_y.reshape(1, -1) * sm, axis=1, keepdims=True)
    sig = jax.nn.sigmoid(logits).reshape(bs, K, K)
    w = (jnp.sort(jnp.sum(sig, axis=2), axis=1) / K) @ pool_w.reshape(K, 1)
    h = (jnp.sort(jnp.sum(sig, axis=1), axis=1) / K) @ pool_h.reshape(K, 1)
    return jnp.clip(jnp.concatenate([c_x, c_y, w, h], axis=1), 0.0, 1.0)


if __name__ == "__main__":
    K = 16          # resolution
    bs = 2
    temperature = 1.0

    key = jax.random.PRNGKey(0)
    x = jax.random.normal(key, (bs, K, K), dtype=jnp.float32)   # mask_logits

    # Deterministic parameter init, exactly as in SpatialIntegral.__init__.
    pos_x, pos_y = make_region_coord_grid(K)                    # (1, K, K) buffers
    pool_w = jnp.ones((K, 1), jnp.float32) / K
    pool_h = jnp.ones((K, 1), jnp.float32) / K

    out = spatial_integral(x, pos_x, pos_y, pool_w, pool_h, temperature)
    out = jax.block_until_ready(out)

    ref = spatial_integral_reference(x, pos_x, pos_y, pool_w, pool_h, temperature)
    np.testing.assert_allclose(np.asarray(out), np.asarray(ref), rtol=1e-5, atol=1e-5)

    print("KERNEL_OK")
</pallas_src>

<mosaic_0001>
module attributes {stable_mosaic.version = 11 : i64} {
  func.func @spatial_integral_kernel(%arg0: i32, %arg1: memref<2x256xf32, #tpu.memory_space<vmem>>, %arg2: memref<256x2xf32, #tpu.memory_space<vmem>>, %arg3: memref<256x32xf32, #tpu.memory_space<vmem>>, %arg4: memref<32x1024xf32, #tpu.memory_space<vmem>>, %arg5: memref<512x32xf32, #tpu.memory_space<vmem>>, %arg6: memref<2x512xf32, #tpu.memory_space<vmem>>, %arg7: memref<512x2xf32, #tpu.memory_space<vmem>>, %arg8: memref<2x4xf32, #tpu.memory_space<vmem>>) attributes {dimension_semantics = [#tpu.dimension_semantics<parallel>], iteration_bounds = array<i64: 1>, scalar_prefetch = 0 : i64, scratch_operands = 0 : i64, tpu.core_type = #tpu.core_type<tc>, window_params = [{transform_indices = @transform_0, window_bounds = array<i64: 2, 256>}, {pipeline_mode = #tpu.pipeline_mode<synchronous>, transform_indices = @transform_1, window_bounds = array<i64: 256, 2>}, {pipeline_mode = #tpu.pipeline_mode<synchronous>, transform_indices = @transform_2, window_bounds = array<i64: 256, 32>}, {pipeline_mode = #tpu.pipeline_mode<synchronous>, transform_indices = @transform_3, window_bounds = array<i64: 32, 1024>}, {pipeline_mode = #tpu.pipeline_mode<synchronous>, transform_indices = @transform_4, window_bounds = array<i64: 512, 32>}, {pipeline_mode = #tpu.pipeline_mode<synchronous>, transform_indices = @transform_5, window_bounds = array<i64: 2, 512>}, {pipeline_mode = #tpu.pipeline_mode<synchronous>, transform_indices = @transform_6, window_bounds = array<i64: 512, 2>}, {transform_indices = @transform_7, window_bounds = array<i64: 2, 4>}]} {
    %c0 = arith.constant 0 : index
    %c0_0 = arith.constant 0 : index
    %0 = vector.load %arg1[%c0, %c0_0] : memref<2x256xf32, #tpu.memory_space<vmem>>, vector<2x256xf32>
    %cst = arith.constant 1.000000e+00 : f32
    %1 = vector.broadcast %cst : f32 to vector<2x256xf32>
    %2 = arith.mulf %0, %1 : vector<2x256xf32>
    %cst_1 = arith.constant dense<0xFF800000> : vector<2xf32>
    %3 = vector.multi_reduction <maximumf>, %2, %cst_1 [1] : vector<2x256xf32> to vector<2xf32>
    %4 = vector.shape_cast %3 : vector<2xf32> to vector<2x1xf32>
    %5 = vector.broadcast %4 : vector<2x1xf32> to vector<2x256xf32>
    %6 = arith.subf %2, %5 : vector<2x256xf32>
    %7 = math.exp %6 : vector<2x256xf32>
    %cst_2 = arith.constant dense<0.000000e+00> : vector<2xf32>
    %8 = vector.multi_reduction <add>, %7, %cst_2 [1] : vector<2x256xf32> to vector<2xf32>
    %9 = vector.shape_cast %8 : vector<2xf32> to vector<2x1xf32>
    %c0_3 = arith.constant 0 : index
    %c0_4 = arith.constant 0 : index
    %10 = vector.load %arg2[%c0_3, %c0_4] : memref<256x2xf32, #tpu.memory_space<vmem>>, vector<256x2xf32>
    %cst_5 = arith.constant dense<0.000000e+00> : vector<2x2xf32>
    %11 = tpu.matmul %7, %10, %cst_5 {dimension_numbers = #tpu.dot_dimension_numbers<[1], [0], [0], [1], [0, 0, 1, 1], [], []>} : vector<2x256xf32>, vector<256x2xf32>, vector<2x2xf32> -> vector<2x2xf32>
    %12 = tpu.reciprocal %9 : vector<2x1xf32> -> vector<2x1xf32>
    %13 = vector.broadcast %12 : vector<2x1xf32> to vector<2x2xf32>
    %14 = arith.mulf %11, %13 : vector<2x2xf32>
    %15 = arith.negf %2 : vector<2x256xf32>
    %16 = math.exp %15 : vector<2x256xf32>
    %cst_6 = arith.constant 1.000000e+00 : f32
    %17 = vector.broadcast %cst_6 : f32 to vector<2x256xf32>
    %18 = arith.addf %17, %16 : vector<2x256xf32>
    %19 = arith.divf %17, %18 : vector<2x256xf32>
    %c0_7 = arith.constant 0 : index
    %c0_8 = arith.constant 0 : index
    %20 = vector.load %arg3[%c0_7, %c0_8] : memref<256x32xf32, #tpu.memory_space<vmem>>, vector<256x32xf32>
    %cst_9 = arith.constant dense<0.000000e+00> : vector<2x32xf32>
    %21 = tpu.matmul %19, %20, %cst_9 {dimension_numbers = #tpu.dot_dimension_numbers<[1], [0], [0], [1], [0, 0, 1, 1], [], []>} : vector<2x256xf32>, vector<256x32xf32>, vector<2x32xf32> -> vector<2x32xf32>
    %c0_10 = arith.constant 0 : index
    %c0_11 = arith.constant 0 : index
    %22 = vector.load %arg4[%c0_10, %c0_11] : memref<32x1024xf32, #tpu.memory_space<vmem>>, vector<32x1024xf32>
    %cst_12 = arith.constant dense<0.000000e+00> : vector<2x1024xf32>
    %23 = tpu.matmul %21, %22, %cst_12 {dimension_numbers = #tpu.dot_dimension_numbers<[1], [0], [0], [1], [0, 0, 1, 1], [], []>} : vector<2x32xf32>, vector<32x1024xf32>, vector<2x1024xf32> -> vector<2x1024xf32>
    %24 = vector.extract_strided_slice %23 {offsets = [0, 0], sizes = [2, 512], strides = [1, 1]} : vector<2x1024xf32> to vector<2x512xf32>
    %25 = vector.extract_strided_slice %23 {offsets = [0, 512], sizes = [2, 512], strides = [1, 1]} : vector<2x1024xf32> to vector<2x512xf32>
    %c0_13 = arith.constant 0 : index
    %c0_14 = arith.constant 0 : index
    %26 = vector.load %arg6[%c0_13, %c0_14] : memref<2x512xf32, #tpu.memory_space<vmem>>, vector<2x512xf32>
    %27 = vector.extract_strided_slice %26 {offsets = [0, 0], sizes = [1, 512], strides = [1, 1]} : vector<2x512xf32> to vector<1x512xf32>
    %28 = vector.extract_strided_slice %26 {offsets = [1, 0], sizes = [1, 512], strides = [1, 1]} : vector<2x512xf32> to vector<1x512xf32>
    %cst_15 = arith.constant 5.000000e-01 : f32
    %29 = vector.broadcast %cst_15 : f32 to vector<1x512xf32>
    %30 = arith.cmpf ogt, %28, %29 : vector<1x512xf32>
    %31 = arith.cmpf olt, %25, %24 : vector<2x512xf32>
    %32 = arith.cmpf oeq, %25, %24 : vector<2x512xf32>
    %33 = vector.broadcast %30 : vector<1x512xi1> to vector<2x512xi1>
    %34 = arith.andi %32, %33 : vector<2x512xi1>
    %35 = arith.ori %31, %34 : vector<2x512xi1>
    %36 = arith.extui %35 : vector<2x512xi1> to vector<2x512xi32>
    %37 = arith.sitofp %36 : vector<2x512xi32> to vector<2x512xf32>
    %c0_16 = arith.constant 0 : index
    %c0_17 = arith.constant 0 : index
    %38 = vector.load %arg5[%c0_16, %c0_17] : memref<512x32xf32, #tpu.memory_space<vmem>>, vector<512x32xf32>
    %cst_18 = arith.constant dense<0.000000e+00> : vector<2x32xf32>
    %39 = tpu.matmul %37, %38, %cst_18 {dimension_numbers = #tpu.dot_dimension_numbers<[1], [0], [0], [1], [0, 0, 1, 1], [], []>} : vector<2x512xf32>, vector<512x32xf32>, vector<2x32xf32> -> vector<2x32xf32>
    %c0_19 = arith.constant 0 : index
    %c0_20 = arith.constant 0 : index
    %40 = vector.load %arg4[%c0_19, %c0_20] : memref<32x1024xf32, #tpu.memory_space<vmem>>, vector<32x512xf32>
    %cst_21 = arith.constant dense<0.000000e+00> : vector<2x512xf32>
    %41 = tpu.matmul %39, %40, %cst_21 {dimension_numbers = #tpu.dot_dimension_numbers<[1], [0], [0], [1], [0, 0, 1, 1], [], []>} : vector<2x32xf32>, vector<32x512xf32>, vector<2x512xf32> -> vector<2x512xf32>
    %42 = vector.broadcast %27 : vector<1x512xf32> to vector<2x512xf32>
    %43 = arith.cmpf oeq, %41, %42 : vector<2x512xf32>
    %44 = arith.extui %43 : vector<2x512xi1> to vector<2x512xi32>
    %45 = arith.sitofp %44 : vector<2x512xi32> to vector<2x512xf32>
    %46 = arith.mulf %24, %45 : vector<2x512xf32>
    %c0_22 = arith.constant 0 : index
    %c0_23 = arith.constant 0 : index
    %47 = vector.load %arg7[%c0_22, %c0_23] : memref<512x2xf32, #tpu.memory_space<vmem>>, vector<512x2xf32>
    %cst_24 = arith.constant dense<0.000000e+00> : vector<2x2xf32>
    %48 = tpu.matmul %46, %47, %cst_24 {dimension_numbers = #tpu.dot_dimension_numbers<[1], [0], [0], [1], [0, 0, 1, 1], [], []>} : vector<2x512xf32>, vector<512x2xf32>, vector<2x2xf32> -> vector<2x2xf32>
    %49 = tpu.concatenate %14, %48 in 1 : vector<2x2xf32>, vector<2x2xf32> -> vector<2x4xf32>
    %cst_25 = arith.constant 0.000000e+00 : f32
    %cst_26 = arith.constant 1.000000e+00 : f32
    %50 = vector.broadcast %cst_25 : f32 to vector<2x4xf32>
    %51 = arith.maximumf %50, %49 : vector<2x4xf32>
    %52 = vector.broadcast %cst_26 : f32 to vector<2x4xf32>
    %53 = arith.minimumf %52, %51 : vector<2x4xf32>
    %c0_27 = arith.constant 0 : index
    %c0_28 = arith.constant 0 : index
    %54 = vector.load %arg8[%c0_27, %c0_28] : memref<2x4xf32, #tpu.memory_space<vmem>>, vector<2x4xf32>
    tpu.vector_store %arg8[%c0_27, %c0_28], %53 {strides = array<i32>} : memref<2x4xf32, #tpu.memory_space<vmem>>, vector<2x4xf32>,
    return
  }
  func.func @transform_0(%arg0: i32) -> (i32, i32) {
    %c0_i32 = arith.constant 0 : i32
    %c0_i32_0 = arith.constant 0 : i32
    return %arg0, %c0_i32 : i32, i32
  }
  func.func @transform_1(%arg0: i32) -> (i32, i32) {
    %c0_i32 = arith.constant 0 : i32
    %c0_i32_0 = arith.constant 0 : i32
    %c0_i32_1 = arith.constant 0 : i32
    return %c0_i32, %c0_i32_0 : i32, i32
  }
  func.func @transform_2(%arg0: i32) -> (i32, i32) {
    %c0_i32 = arith.constant 0 : i32
    %c0_i32_0 = arith.constant 0 : i32
    %c0_i32_1 = arith.constant 0 : i32
    return %c0_i32, %c0_i32_0 : i32, i32
  }
  func.func @transform_3(%arg0: i32) -> (i32, i32) {
    %c0_i32 = arith.constant 0 : i32
    %c0_i32_0 = arith.constant 0 : i32
    %c0_i32_1 = arith.constant 0 : i32
    return %c0_i32, %c0_i32_0 : i32, i32
  }
  func.func @transform_4(%arg0: i32) -> (i32, i32) {
    %c0_i32 = arith.constant 0 : i32
    %c0_i32_0 = arith.constant 0 : i32
    %c0_i32_1 = arith.constant 0 : i32
    return %c0_i32, %c0_i32_0 : i32, i32
  }
  func.func @transform_5(%arg0: i32) -> (i32, i32) {
    %c0_i32 = arith.constant 0 : i32
    %c0_i32_0 = arith.constant 0 : i32
    %c0_i32_1 = arith.constant 0 : i32
    return %c0_i32, %c0_i32_0 : i32, i32
  }
  func.func @transform_6(%arg0: i32) -> (i32, i32) {
    %c0_i32 = arith.constant 0 : i32
    %c0_i32_0 = arith.constant 0 : i32
    %c0_i32_1 = arith.constant 0 : i32
    return %c0_i32, %c0_i32_0 : i32, i32
  }
  func.func @transform_7(%arg0: i32) -> (i32, i32) {
    %c0_i32 = arith.constant 0 : i32
    %c0_i32_0 = arith.constant 0 : i32
    return %arg0, %c0_i32 : i32, i32
  }
}

</mosaic_0001>

<bundles_post_ra>
// kernel: tpu_custom_call.1
= control target key start
LH: loop header
LB: loop body
LE: loop exit
PB: predicated region body
PF: predicated region fallthrough
CT: control target
= control target key end

     0   :  { %v32_v3 = vlaneseq  ;;  %v1591_v5 = vmov 1983009808   ;;  %vm39_vm0 = vcmask 1041408   ;;  %s2455_s0 = inlined_call_operand.vmem [shape: f32[2,256], index: 0, kind: input, shape index: {}]   ;;  %s2456_s1 = inlined_call_operand.vmem [shape: f32[256,2], index: 1, kind: input, shape index: {}]   ;;  %s2457_s2 = inlined_call_operand.vmem [shape: f32[256,32], index: 2, kind: input, shape index: {}]   ;;  %s2458_s3 = inlined_call_operand.vmem [shape: f32[32,1024], index: 3, kind: input, shape index: {}]   ;;  %s2459_s4 = inlined_call_operand.vmem [shape: f32[512,32], index: 4, kind: input, shape index: {}]   ;;  %s2460_s5 = inlined_call_operand.vmem [shape: f32[2,512], index: 5, kind: input, shape index: {}]   ;;  %s2461_s6 = inlined_call_operand.vmem [shape: f32[512,2], index: 6, kind: input, shape index: {}]   ;;  %s2462_s7 = inlined_call_operand.hbm [shape: f32[2,4], index: 7, kind: output, shape index: {}]  }
   0x1   :  { %v214_v0 = vld [vmem:[%s2457_s2 + $0xf8] sm:$0xff]  ;;  %v213_v2 = vld [vmem:[%s2457_s2 + $0xf0] sm:$0xff]  ;;  %v30_v6 = vunpack.c.l.s4 %v1591_v5  ;;  %v212_v7 = vld [vmem:[%s2457_s2 + $0xe8] sm:$0xff] }
   0x2   :  { %v198_v1 = vld [vmem:[%s2457_s2 + $0x78] sm:$0xff]  ;;  %1379 = vmatprep.subr.mxu1 %v214_v0  ;;  %v197_v4 = vld [vmem:[%s2457_s2 + $0x70] sm:$0xff]  ;;  %v1653_v8 = vshrl.u32 %v32_v3, 7  ;;  %v196_v9 = vld [vmem:[%s2457_s2 + $0x68] sm:$0xff] }
   0x3   :  { %1380 = vmatpush3.msra.mxu1 %v198_v1  ;;  %v31_v10 = vunpack.c.0.s8 %v30_v6  ;;  %v211_v11 = vld [vmem:[%s2457_s2 + $0xe0] sm:$0xff]  ;;  %v210_v16 = vld [vmem:[%s2457_s2 + $0xd8] sm:$0xff]  ;;  %v209_v19 = vld [vmem:[%s2457_s2 + $0xd0] sm:$0xff] }
   0x4   :  { %1381 = vmatprep.subr.mxu1 %v213_v2  ;;  %v1664_v12 = vld [vmem:[%s2455_s0] sm:$0xf]  ;;  %v194_v17 = vld [vmem:[%s2457_s2 + $0x58] sm:$0xff]  ;;  %v193_v20 = vld [vmem:[%s2457_s2 + $0x50] sm:$0xff] }
   0x5   :  { %1382 = vmatpush3.msra.mxu1 %v197_v4  ;;  %v195_v13 = vld [vmem:[%s2457_s2 + $0x60] sm:$0xff]  ;;  %v1670_v14 = vsub.s32 %v31_v10, %v1653_v8  ;;  %v1325_v15 = vmul.f32 -1.442695, %v1664_v12  ;;  %v208_v23 = vld [vmem:[%s2457_s2 + $0xc8] sm:$0xff]  ;;  %v104_v26 = vld [vmem:[%s2456_s1 + $0xf8] sm:$0xff] }
   0x6   :  { %1383 = vmatprep.subr.mxu1 %v212_v7  ;;  %v192_v24 = vld [vmem:[%s2457_s2 + $0x48] sm:$0xff]  ;;  %v88_v27 = vld [vmem:[%s2456_s1 + $0x78] sm:$0xff]  ;;  %v207_v29 = vld [vmem:[%s2457_s2 + $0xc0] sm:$0xff]  ;;  %1344 = vmatprep.subr.mxu0 %v104_v26 }
   0x7   :  { %1384 = vmatpush3.msra.mxu1 %v196_v9  ;;  %v35_v18 = vrot.slane %v1664_v12, %v1670_v14  ;;  %1561 = vpow2.f32 %v1325_v15  ;;  %v103_v30 = vld [vmem:[%s2456_s1 + $0xf0] sm:$0xff]  ;;  %v191_v31 = vld [vmem:[%s2457_s2 + $0x40] sm:$0xff]  ;;  %1345 = vmatpush3.msra.mxu0 %v88_v27 }
   0x8   :  { %1385 = vmatprep.subr.mxu1 %v211_v11  ;;  %v87_v32 = vld [vmem:[%s2456_s1 + $0x70] sm:$0xff] }
   0x9   :  { %1386 = vmatpush3.msra.mxu1 %v195_v13  ;;  %v36_v21 = vcombine.high %v35_v18, %v35_v18  ;;  %v40_v22 = vsel %vm39_vm0, %v35_v18, -inf }
   0xa   :  { %1387 = vmatprep.subr.mxu1 %v210_v16 }
   0xb   :  { %1388 = vmatpush3.msra.mxu1 %v194_v17  ;;  %v41_v25 = vsel %vm39_vm0, %v36_v21, -inf }
   0xc   :  { %1389 = vmatprep.subr.mxu1 %v209_v19  ;;  %v42_v28 = vmax.f32 %v40_v22, %v41_v25 }
   0xd   :  { %1390 = vmatpush3.msra.mxu1 %v193_v20 }
   0xe   :  { %1391 = vmatprep.subr.mxu1 %v208_v23 }
   0xf   :  { %12 = vsyncpa [#allocation3], 0  ;;  %1392 = vmatpush3.msra.mxu1 %v192_v24  ;;  %43 = vmax.xlane.f32.xlu0 %v42_v28  ;;  %v206_v33 = vld [vmem:[%s2457_s2 + $0xb8] sm:$0xff]  ;;  %v102_v34 = vld [vmem:[%s2456_s1 + $0xe8] sm:$0xff]  ;;  %vm2463_vm1 = vcmask 261120   ;;  %s1597_s23 = smov [#allocation2]  }
  0x10   :  { %1393 = vmatprep.subr.mxu1 %v207_v29  ;;  %v190_v35 = vld [vmem:[%s2457_s2 + $0x38] sm:$0xff]  ;;  %1346 = vmatprep.subr.mxu0 %v103_v30  ;;  %v86_v36 = vld [vmem:[%s2456_s1 + $0x68] sm:$0xff]  ;;  %v205_v37 = vld [vmem:[%s2457_s2 + $0xb0] sm:$0xff] }
  0x11   :  { %1394 = vmatpush3.msra.mxu1 %v191_v31  ;;  %1347 = vmatpush3.msra.mxu0 %v87_v32  ;;  %v101_v38 = vld [vmem:[%s2456_s1 + $0xe0] sm:$0xff]  ;;  %v189_v39 = vld [vmem:[%s2457_s2 + $0x30] sm:$0xff]  ;;  %v204_v40 = vld [vmem:[%s2457_s2 + $0xa8] sm:$0xff]  ;;  %v1592_v31 = vmov 0.0   ;;  %v1593_v32 = vmov 269488144  }
  0x12   :  { %1395 = vmatprep.subr.mxu1 %v206_v33  ;;  %1348 = vmatprep.subr.mxu0 %v102_v34  ;;  %v188_v41 = vld [vmem:[%s2457_s2 + $0x28] sm:$0xff]  ;;  %v203_v43 = vld [vmem:[%s2457_s2 + $0xa0] sm:$0xff]  ;;  %v202_v46 = vld [vmem:[%s2457_s2 + $0x98] sm:$0xff]  ;;  %v47_v33 = vunpack.c.l.s4 %v1593_v32 }
  0x13   :  { %1396 = vmatpush3.msra.mxu1 %v190_v35  ;;  %1349 = vmatpush3.msra.mxu0 %v86_v36  ;;  %v187_v45 = vld [vmem:[%s2457_s2 + $0x20] sm:$0xff]  ;;  %v186_v47 = vld [vmem:[%s2457_s2 + $0x18] sm:$0xff]  ;;  %v201_v48 = vld [vmem:[%s2457_s2 + $0x90] sm:$0xff] }
  0x14   :  { %1397 = vmatprep.subr.mxu1 %v205_v37  ;;  %1350 = vmatprep.subr.mxu0 %v101_v38  ;;  %v1562_v42 = vpop.eup %1561  ;;  %v185_v49 = vld [vmem:[%s2457_s2 + $0x10] sm:$0xff]  ;;  %v200_v50 = vld [vmem:[%s2457_s2 + $0x88] sm:$0xff]  ;;  %v199_v52 = vld [vmem:[%s2457_s2 + $0x80] sm:$0xff]  ;;  %v48_v34 = vunpack.c.0.s8 %v47_v33 }
  0x15   :  { %1398 = vmatpush3.msra.mxu1 %v189_v39  ;;  %v180_v44 = vadd.f32 1.0, %v1562_v42  ;;  %v184_v51 = vld [vmem:[%s2457_s2 + $0x8] sm:$0xff]  ;;  %v183_v53 = vld [vmem:[%s2457_s2] sm:$0xff]  ;;  %v100_v55 = vld [vmem:[%s2456_s1 + $0xd8] sm:$0xff] }
  0x16   :  { %1399 = vmatprep.subr.mxu1 %v204_v40  ;;  %v85_v54 = vld [vmem:[%s2456_s1 + $0x60] sm:$0xff]  ;;  %v84_v56 = vld [vmem:[%s2456_s1 + $0x58] sm:$0xff]  ;;  %v99_v57 = vld [vmem:[%s2456_s1 + $0xd0] sm:$0xff]  ;;  %v51_v35 = vsub.s32 %v48_v34, %v1653_v8 }
  0x17   :  { %1400 = vmatpush3.msra.mxu1 %v188_v41  ;;  %1563 = vrcp.f32 %v180_v44  ;;  %1351 = vmatpush3.msra.mxu0 %v85_v54  ;;  %v83_v58 = vld [vmem:[%s2456_s1 + $0x50] sm:$0xff]  ;;  %v98_v59 = vld [vmem:[%s2456_s1 + $0xc8] sm:$0xff]  ;;  %v97_v61 = vld [vmem:[%s2456_s1 + $0xc0] sm:$0xff] }
  0x18   :  { %1401 = vmatprep.subr.mxu1 %v203_v43  ;;  %1352 = vmatprep.subr.mxu0 %v100_v55  ;;  %v82_v60 = vld [vmem:[%s2456_s1 + $0x48] sm:$0xff]  ;;  %v81_v63 = vld [vmem:[%s2456_s1 + $0x40] sm:$0xff]  ;;  %v96_v1 = vld [vmem:[%s2456_s1 + $0xb8] sm:$0xff] }
  0x19   :  { %1402 = vmatpush3.msra.mxu1 %v187_v45  ;;  %1353 = vmatpush3.msra.mxu0 %v84_v56  ;;  %v80_v2 = vld [vmem:[%s2456_s1 + $0x38] sm:$0xff]  ;;  %v95_v4 = vld [vmem:[%s2456_s1 + $0xb0] sm:$0xff]  ;;  %v94_v6 = vld [vmem:[%s2456_s1 + $0xa8] sm:$0xff] }
  0x1a   :  { %1403 = vmatprep.subr.mxu1 %v202_v46  ;;  %1354 = vmatprep.subr.mxu0 %v99_v57  ;;  %v79_v5 = vld [vmem:[%s2456_s1 + $0x30] sm:$0xff]  ;;  %v78_v7 = vld [vmem:[%s2456_s1 + $0x28] sm:$0xff]  ;;  %v93_v9 = vld [vmem:[%s2456_s1 + $0xa0] sm:$0xff] }
  0x1b   :  { %1404 = vmatpush3.msra.mxu1 %v186_v47  ;;  %1355 = vmatpush3.msra.mxu0 %v83_v58  ;;  %v77_v10 = vld [vmem:[%s2456_s1 + $0x20] sm:$0xff]  ;;  %v92_v11 = vld [vmem:[%s2456_s1 + $0x98] sm:$0xff]  ;;  %v91_v15 = vld [vmem:[%s2456_s1 + $0x90] sm:$0xff] }
  0x1c   :  { %1405 = vmatprep.subr.mxu1 %v201_v48  ;;  %1356 = vmatprep.subr.mxu0 %v98_v59  ;;  %v76_v13 = vld [vmem:[%s2456_s1 + $0x18] sm:$0xff]  ;;  %v75_v16 = vld [vmem:[%s2456_s1 + $0x10] sm:$0xff]  ;;  %v90_v17 = vld [vmem:[%s2456_s1 + $0x88] sm:$0xff] }
  0x1d   :  { %1406 = vmatpush3.msra.mxu1 %v185_v49  ;;  %1357 = vmatpush3.msra.mxu0 %v82_v60  ;;  %v1840_v18 = vld [vmem:[%s2458_s3 + $0xd8] sm:$0xff]  ;;  %v74_v19 = vld [vmem:[%s2456_s1 + $0x8] sm:$0xff]  ;;  %v1849_v20 = vld [vmem:[%s2458_s3 + $0xd0] sm:$0xff] }
  0x1e   :  { %1407 = vmatprep.subr.mxu1 %v200_v50  ;;  %1358 = vmatprep.subr.mxu0 %v97_v61  ;;  %v89_v21 = vld [vmem:[%s2456_s1 + $0x80] sm:$0xff]  ;;  %v1858_v22 = vld [vmem:[%s2458_s3 + $0x98] sm:$0xff]  ;;  %v1867_v24 = vld [vmem:[%s2458_s3 + $0x90] sm:$0xff] }
  0x1f   :  { %1408 = vmatpush3.msra.mxu1 %v184_v51  ;;  %1359 = vmatpush3.msra.mxu0 %v81_v63  ;;  %v73_v23 = vld [vmem:[%s2456_s1] sm:$0xff]  ;;  %v1872_v25 = vld [vmem:[%s2458_s3 + $0xc8] sm:$0xff]  ;;  %v1879_v26 = vld [vmem:[%s2458_s3 + $0x58] sm:$0xff] }
  0x20   :  { %1409 = vmatprep.subr.mxu1 %v199_v52  ;;  %1360 = vmatprep.subr.mxu0 %v96_v1  ;;  %v1885_v27 = vld [vmem:[%s2458_s3 + $0x50] sm:$0xff]  ;;  %v1891_v28 = vld [vmem:[%s2458_s3 + $0x18] sm:$0xff]  ;;  %v1911_v44 = vld [vmem:[%s2458_s3 + $0xc0] sm:$0xff] }
  0x21   :  { %1410 = vmatpush3.msra.mxu1 %v183_v53  ;;  %1361 = vmatpush3.msra.mxu0 %v80_v2  ;;  %v1897_v29 = vld [vmem:[%s2458_s3 + $0x10] sm:$0xff]  ;;  %v327_v30 = vld [vmem:[%s2458_s3 + $0xf8] sm:$0xff]  ;;  %v1928_v47 = vld [vmem:[%s2458_s3 + $0x48] sm:$0xff] }
  0x22   :  { %1362 = vmatprep.subr.mxu0 %v95_v4  ;;  %427 = vmatprep.subr.mxu1 %v1840_v18  ;;  %v1935_v48 = vld [vmem:[%s2458_s3 + $0x40] sm:$0xff]  ;;  %v1941_v49 = vld [vmem:[%s2458_s3 + $0x8] sm:$0xff]  ;;  %v326_v56 = vld [vmem:[%s2458_s3 + $0xf0] sm:$0xff] }
  0x23   :  { %1363 = vmatpush3.msra.mxu0 %v79_v5  ;;  %v1947_v50 = vld [vmem:[%s2458_s3] sm:$0xff]  ;;  %v325_v51 = vld [vmem:[%s2458_s3 + $0xe8] sm:$0xff]  ;;  %v319_v58 = vld [vmem:[%s2458_s3 + $0xb8] sm:$0xff] }
  0x24   :  { %v1564_v62 = vpop.eup %1563  ;;  %1364 = vmatprep.subr.mxu0 %v94_v6  ;;  %v324_v55 = vld [vmem:[%s2458_s3 + $0xe0] sm:$0xff]  ;;  %v317_v57 = vld [vmem:[%s2458_s3 + $0xa8] sm:$0xff]  ;;  %v318_v60 = vld [vmem:[%s2458_s3 + $0xb0] sm:$0xff] }
  0x25   :  { %v222_v0 = vrot.slane %v1564_v62, %v1670_v14  ;;  %1365 = vmatpush3.msra.mxu0 %v78_v7  ;;  %v316_v59 = vld [vmem:[%s2458_s3 + $0xa0] sm:$0xff]  ;;  %v309_v61 = vld [vmem:[%s2458_s3 + $0x68] sm:$0xff]  ;;  %v311_v62 = vld [vmem:[%s2458_s3 + $0x78] sm:$0xff] }
  0x26   :  { %1366 = vmatprep.subr.mxu0 %v93_v9  ;;  %v308_v63 = vld [vmem:[%s2458_s3 + $0x60] sm:$0xff]  ;;  %v301_v1 = vld [vmem:[%s2458_s3 + $0x28] sm:$0xff]  ;;  %v303_v2 = vld [vmem:[%s2458_s3 + $0x38] sm:$0xff] }
  0x27   :  { %v223_v3 = vcombine.high %v222_v0, %v222_v0  ;;  %1367 = vmatpush3.msra.mxu0 %v77_v10  ;;  %v302_v4 = vld [vmem:[%s2458_s3 + $0x30] sm:$0xff]  ;;  %v710_v5 = vld [vmem:[%s2459_s4 + $0xf8] sm:$0xff]  ;;  %v691_v32 = vld [vmem:[%s2459_s4 + $0x60] sm:$0xff] }
  0x28   :  { %1368 = vmatprep.subr.mxu0 %v92_v11  ;;  %v742_v6 = vld [vmem:[%s2459_s4 + $0x1f8] sm:$0xff]  ;;  %v709_v10 = vld [vmem:[%s2459_s4 + $0xf0] sm:$0xff]  ;;  %v723_v33 = vld [vmem:[%s2459_s4 + $0x160] sm:$0xff] }
  0x29   :  { %290 = vmatprep.mubr.f32.mxu1 %v223_v3  ;;  %1369 = vmatpush3.msra.mxu0 %v76_v13  ;;  %v300_v3 = vld [vmem:[%s2458_s3 + $0x20] sm:$0xff]  ;;  %v694_v7 = vld [vmem:[%s2459_s4 + $0x78] sm:$0xff]  ;;  %v741_v11 = vld [vmem:[%s2459_s4 + $0x1f0] sm:$0xff] }
  0x2a   :  { %291 = vmatmul.mubr.f32.vlgmr.msra.gmra.mxu1 %v222_v0  ;;  %1370 = vmatprep.subr.mxu0 %v91_v15  ;;  %v310_v0 = vld [vmem:[%s2458_s3 + $0x70] sm:$0xff]  ;;  %v726_v9 = vld [vmem:[%s2459_s4 + $0x178] sm:$0xff] }
  0x2b   :  { %1371 = vmatpush3.msra.mxu0 %v75_v16  ;;  %428 = vmatpush1.msra.mxu1 %v1849_v20  ;;  %v693_v13 = vld [vmem:[%s2459_s4 + $0x70] sm:$0xff]  ;;  %v708_v16 = vld [vmem:[%s2459_s4 + $0xe8] sm:$0xff]  ;;  %v706_v34 = vld [vmem:[%s2459_s4 + $0xd8] sm:$0xff] }
  0x2c   :  { %1372 = vmatprep.subr.mxu0 %v90_v17  ;;  %429 = vmatprep.subr.mxu1 %v1858_v22  ;;  %v725_v15 = vld [vmem:[%s2459_s4 + $0x170] sm:$0xff]  ;;  %v740_v17 = vld [vmem:[%s2459_s4 + $0x1e8] sm:$0xff] }
  0x2d   :  { %1373 = vmatpush3.msra.mxu0 %v74_v19  ;;  %430 = vmatpush1.msra.mxu1 %v1867_v24  ;;  %v692_v19 = vld [vmem:[%s2459_s4 + $0x68] sm:$0xff] }
  0x2e   :  { %1374 = vmatprep.subr.mxu0 %v89_v21  ;;  %431 = vmatprep.subr.mxu1 %v1879_v26  ;;  %v724_v21 = vld [vmem:[%s2459_s4 + $0x168] sm:$0xff] }
  0x2f   :  { %1375 = vmatpush3.msra.mxu0 %v73_v23  ;;  %432 = vmatpush1.msra.mxu1 %v1885_v27  ;;  %v707_v23 = vld [vmem:[%s2459_s4 + $0xe0] sm:$0xff] }
  0x30   :  { %356 = vmatprep.subr.mxu0 %v1872_v25  ;;  %433 = vmatprep.subr.mxu1 %v1891_v28 }
  0x31   :  { %434 = vmatpush1.msra.mxu1 %v1897_v29  ;;  %467 = vmatprep.mubr.f32.mxu1 %v1592_v31 }
  0x32   :  { %569 = vmatprep.subr.mxu1 %v327_v30  ;;  %v739_v30 = vld [vmem:[%s2459_s4 + $0x1e0] sm:$0xff] }
  0x98   :  { %v44_v36 = vpop.xlane.xlu0 %43 }
  0x99   :  { %v52_v37 = vrot.slane %v44_v36, %v51_v35  ;;  %v738_v35 = vld [vmem:[%s2459_s4 + $0x1d8] sm:$0xff] }
  0x9a   :  { %v690_v36 = vld [vmem:[%s2459_s4 + $0x58] sm:$0xff] }
  0x9b   :  { %v54_v38 = vsub.f32 %v1664_v12, %v52_v37  ;;  %v1917_v12 = vld [vmem:[%s2458_s3 + $0x88] sm:$0xff]  ;;  %v722_v37 = vld [vmem:[%s2459_s4 + $0x158] sm:$0xff] }
  0x9d   :  { %v55_v39 = vmul.f32 1.442695, %v54_v38  ;;  %v705_v38 = vld [vmem:[%s2459_s4 + $0xd0] sm:$0xff] }
  0x9f   :  { %1565 = vpow2.f32 %v55_v39  ;;  %v737_v39 = vld [vmem:[%s2459_s4 + $0x1d0] sm:$0xff] }
  0xac   :  { %v1566_v40 = vpop.eup %1565 }
  0xad   :  { %v64_v41 = vrot.slane %v1566_v40, %v1670_v14  ;;  %v1922_v14 = vld [vmem:[%s2458_s3 + $0x80] sm:$0xff]  ;;  %v689_v40 = vld [vmem:[%s2459_s4 + $0x50] sm:$0xff]  ;;  %s1317_s3 = sshll.u32 %s1597_s23, 4  ;;  %s1318_s3 = int_to_ptr.vmem [resolvable:$true] %s1317_s3 }
  0xae   :  { %s1569_s24 = scalar_lea.vmem %s1318_s3, 32  ;;  %p1574_p1 = scmp.lt.s32.totalorder %s1318_s3, %s1318_s3 }
  0xaf   :  { %v65_v42 = vcombine.high %v64_v41, %v64_v41  ;;  %v68_v43 = vsel %vm39_vm0, %v64_v41, 0.0  ;;  %p1570_p0 = scmp.ne.s32.totalorder %s1318_s3, %s1569_s24  ;;  %p1575_p2 = scmp.lt.s32.totalorder %s1569_s24, %s1569_s24 }
  0xb1   :  { %169 = vmatprep.mubr.f32.mxu0 %v65_v42  ;;  %v69_v45 = vsel %vm39_vm0, %v65_v42, 0.0  ;;  %v704_v42 = vld [vmem:[%s2459_s4 + $0xc8] sm:$0xff]  ;;  %p1576_p3 = por %p1575_p2, %p1574_p1 }
  0xb2   :  { %170 = vmatmul.mubr.f32.vlgmr.msra.gmra.mxu0 %v64_v41  ;;  %v70_v46 = vadd.f32 %v69_v45, %v68_v43  ;;  %v721_v41 = vld [vmem:[%s2459_s4 + $0x150] sm:$0xff]  ;;  %v736_v43 = vld [vmem:[%s2459_s4 + $0x1c8] sm:$0xff] }
  0xb3   :  { %357 = vmatpush1.msra.mxu0 %v1911_v44  ;;  %396 = vmatprep.mubr.f32.mxu0 %v1592_v31  ;;  %v688_v45 = vld [vmem:[%s2459_s4 + $0x48] sm:$0xff]  ;;  %p1577_p4 = pnand %p1576_p3, %p1570_p0 }
  0xb4   :  { %71 = vadd.xlane.f32.xlu0 %v70_v46  ;;  %358 = vmatprep.subr.mxu0 %v1917_v12  ;;  %v720_v46 = vld [vmem:[%s2459_s4 + $0x148] sm:$0xff] }
  0xb5   :  { %359 = vmatpush1.msra.mxu0 %v1922_v14 }
  0xb6   :  { %360 = vmatprep.subr.mxu0 %v1928_v47 }
  0xb7   :  { %361 = vmatpush1.msra.mxu0 %v1935_v48 }
  0xb8   :  { %362 = vmatprep.subr.mxu0 %v1941_v49 }
  0xb9   :  { %363 = vmatpush1.msra.mxu0 %v1947_v50 }
  0xba   :  { %498 = vmatprep.subr.mxu0 %v325_v51  ;;  %v703_v51 = vld [vmem:[%s2459_s4 + $0xc0] sm:$0xff] }
  0xea   :  { %v1411_v52 = vpop.f32.mrf.mxu1 }
  0xec   :  { %v1412_v53 = vpop.f32.mrf.mxu1 }
  0xed   :  { %v1413_v54 = vadd.f32 %v1412_v53, %v1411_v52  ;;  %v735_v52 = vld [vmem:[%s2459_s4 + $0x1c0] sm:$0xff] }
  0xee   :  { %v687_v53 = vld [vmem:[%s2459_s4 + $0x40] sm:$0xff] }
  0xef   :  { %1326 = vmatmul.mubr.msk.f32.vlgmr.msra.gmra.mxu0 %vm2463_vm1, %v1413_v54  ;;  %1327 = vmatmul.mubr.msk.f32.vlgmr.msra.gmra.mxu1 %vm2463_vm1, %v1413_v54 }
  0xf0   :  { %499 = vmatpush1.msra.mxu0 %v324_v55  ;;  %570 = vmatpush1.msra.mxu1 %v326_v56  ;;  %v702_v55 = vld [vmem:[%s2459_s4 + $0xb8] sm:$0xff] }
  0xf1   :  { %500 = vmatprep.subr.mxu0 %v317_v57  ;;  %571 = vmatprep.subr.mxu1 %v319_v58  ;;  %v734_v56 = vld [vmem:[%s2459_s4 + $0x1b8] sm:$0xff] }
  0xf2   :  { %501 = vmatpush1.msra.mxu0 %v316_v59  ;;  %572 = vmatpush1.msra.mxu1 %v318_v60  ;;  %v686_v57 = vld [vmem:[%s2459_s4 + $0x38] sm:$0xff]  ;;  %v701_v59 = vld [vmem:[%s2459_s4 + $0xb0] sm:$0xff] }
  0xf3   :  { %502 = vmatprep.subr.mxu0 %v309_v61  ;;  %573 = vmatprep.subr.mxu1 %v311_v62  ;;  %v718_v58 = vld [vmem:[%s2459_s4 + $0x138] sm:$0xff]  ;;  %v733_v60 = vld [vmem:[%s2459_s4 + $0x1b0] sm:$0xff] }
  0xf4   :  { %503 = vmatpush1.msra.mxu0 %v308_v63  ;;  %574 = vmatpush1.msra.mxu1 %v310_v0  ;;  %v685_v61 = vld [vmem:[%s2459_s4 + $0x30] sm:$0xff]  ;;  %v700_v63 = vld [vmem:[%s2459_s4 + $0xa8] sm:$0xff] }
  0xf5   :  { %504 = vmatprep.subr.mxu0 %v301_v1  ;;  %575 = vmatprep.subr.mxu1 %v303_v2  ;;  %v717_v62 = vld [vmem:[%s2459_s4 + $0x130] sm:$0xff]  ;;  %v732_v0 = vld [vmem:[%s2459_s4 + $0x1a8] sm:$0xff] }
  0xf6   :  { %505 = vmatpush1.msra.mxu0 %v300_v3  ;;  %538 = vmatprep.mubr.f32.mxu0 %v1592_v31  ;;  %v684_v1 = vld [vmem:[%s2459_s4 + $0x28] sm:$0xff]  ;;  %v699_v3 = vld [vmem:[%s2459_s4 + $0xa0] sm:$0xff] }
  0xf7   :  { %576 = vmatpush1.msra.mxu1 %v302_v4  ;;  %609 = vmatprep.mubr.f32.mxu1 %v1592_v31  ;;  %v716_v2 = vld [vmem:[%s2459_s4 + $0x128] sm:$0xff]  ;;  %v731_v4 = vld [vmem:[%s2459_s4 + $0x1a0] sm:$0xff] }
  0xf8   :  { %1328 = vmatmul.mubr.msk.f32.vlgmr.msra.gmra.mxu0 %vm2463_vm1, %v1413_v54  ;;  %1329 = vmatmul.mubr.msk.f32.vlgmr.msra.gmra.mxu1 %vm2463_vm1, %v1413_v54  ;;  %v719_v54 = vld [vmem:[%s2459_s4 + $0x140] sm:$0xff] }
  0xf9   :  { %1414 = vmatprep.subr.mxu0 %v710_v5  ;;  %1449 = vmatprep.subr.mxu1 %v742_v6  ;;  %v683_v5 = vld [vmem:[%s2459_s4 + $0x20] sm:$0xff] }
  0xfa   :  { %1415 = vmatpush3.msra.mxu0 %v694_v7  ;;  %1450 = vmatpush3.msra.mxu1 %v726_v9  ;;  %v715_v6 = vld [vmem:[%s2459_s4 + $0x120] sm:$0xff]  ;;  %v698_v7 = vld [vmem:[%s2459_s4 + $0x98] sm:$0xff] }
  0xfb   :  { %1416 = vmatprep.subr.mxu0 %v709_v10  ;;  %1451 = vmatprep.subr.mxu1 %v741_v11  ;;  %v730_v9 = vld [vmem:[%s2459_s4 + $0x198] sm:$0xff] }
  0xfc   :  { %1417 = vmatpush3.msra.mxu0 %v693_v13  ;;  %1452 = vmatpush3.msra.mxu1 %v725_v15  ;;  %v682_v10 = vld [vmem:[%s2459_s4 + $0x18] sm:$0xff]  ;;  %v697_v13 = vld [vmem:[%s2459_s4 + $0x90] sm:$0xff] }
  0xfd   :  { %1418 = vmatprep.subr.mxu0 %v708_v16  ;;  %1453 = vmatprep.subr.mxu1 %v740_v17  ;;  %v714_v11 = vld [vmem:[%s2459_s4 + $0x118] sm:$0xff]  ;;  %v729_v15 = vld [vmem:[%s2459_s4 + $0x190] sm:$0xff] }
  0xfe   :  { %1419 = vmatpush3.msra.mxu0 %v692_v19  ;;  %1454 = vmatpush3.msra.mxu1 %v724_v21  ;;  %v681_v16 = vld [vmem:[%s2459_s4 + $0x10] sm:$0xff]  ;;  %v696_v19 = vld [vmem:[%s2459_s4 + $0x88] sm:$0xff] }
  0xff   :  { %1420 = vmatprep.subr.mxu0 %v707_v23  ;;  %1455 = vmatprep.subr.mxu1 %v739_v30  ;;  %v713_v17 = vld [vmem:[%s2459_s4 + $0x110] sm:$0xff]  ;;  %v728_v21 = vld [vmem:[%s2459_s4 + $0x188] sm:$0xff] }
 0x100   :  { %1421 = vmatpush3.msra.mxu0 %v691_v32  ;;  %1456 = vmatpush3.msra.mxu1 %v723_v33  ;;  %v680_v23 = vld [vmem:[%s2459_s4 + $0x8] sm:$0xff]  ;;  %v695_v32 = vld [vmem:[%s2459_s4 + $0x80] sm:$0xff] }
 0x101   :  { %1422 = vmatprep.subr.mxu0 %v706_v34  ;;  %1457 = vmatprep.subr.mxu1 %v738_v35  ;;  %v712_v30 = vld [vmem:[%s2459_s4 + $0x108] sm:$0xff]  ;;  %v727_v33 = vld [vmem:[%s2459_s4 + $0x180] sm:$0xff] }
 0x102   :  { %1423 = vmatpush3.msra.mxu0 %v690_v36  ;;  %1458 = vmatpush3.msra.mxu1 %v722_v37  ;;  %v679_v34 = vld [vmem:[%s2459_s4] sm:$0xff] }
 0x103   :  { %1424 = vmatprep.subr.mxu0 %v705_v38  ;;  %1459 = vmatprep.subr.mxu1 %v737_v39  ;;  %v711_v35 = vld [vmem:[%s2459_s4 + $0x100] sm:$0xff] }
 0x104   :  { %1425 = vmatpush3.msra.mxu0 %v689_v40  ;;  %1460 = vmatpush3.msra.mxu1 %v721_v41  ;;  %v2202_v39 = vld [vmem:[%s2460_s5] sm:$0xff]  ;;  %v629_v40 = vsub.s32 1, %v1653_v8  ;;  %v1594_v41 = vmov 0  }
 0x105   :  { %1426 = vmatprep.subr.mxu0 %v704_v42  ;;  %1461 = vmatprep.subr.mxu1 %v736_v43  ;;  %vm617_vm2 = vcmp.gt.f32.partialorder %v2202_v39, 0.5  ;;  %v637_v43 = vsub.s32 5, %v1653_v8 }
 0x106   :  { %1427 = vmatpush3.msra.mxu0 %v688_v45  ;;  %1462 = vmatpush3.msra.mxu1 %v720_v46  ;;  %v626_v42 = vsel %vm617_vm2, 1, %v1594_v41  ;;  %v641_v45 = vsub.s32 7, %v1653_v8  ;;  %v1137_v41 = vld [vmem:[%s2461_s6 + $0x140] sm:$0xff] }
 0x107   :  { %1428 = vmatprep.subr.mxu0 %v703_v51  ;;  %1463 = vmatprep.subr.mxu1 %v735_v52  ;;  %v638_v52 = vrot.slane %v626_v42, %v637_v43  ;;  %v1152_v43 = vld [vmem:[%s2461_s6 + $0x1b8] sm:$0xff] }
 0x108   :  { %1429 = vmatpush3.msra.mxu0 %v687_v53  ;;  %1464 = vmatpush3.msra.mxu1 %v719_v54 }
 0x109   :  { %1430 = vmatprep.subr.mxu0 %v702_v55  ;;  %1465 = vmatprep.subr.mxu1 %v734_v56  ;;  %v642_v55 = vrot.slane %v626_v42, %v641_v45  ;;  %v1119_v45 = vld [vmem:[%s2461_s6 + $0xb0] sm:$0xff] }
 0x10a   :  { %1431 = vmatpush3.msra.mxu0 %v686_v57  ;;  %1466 = vmatpush3.msra.mxu1 %v718_v58  ;;  %v654_v58 = vrot.slane %v638_v52, %v629_v40  ;;  %v1151_v52 = vld [vmem:[%s2461_s6 + $0x1b0] sm:$0xff] }
 0x10b   :  { %1432 = vmatprep.subr.mxu0 %v701_v59  ;;  %1467 = vmatprep.subr.mxu1 %v733_v60 }
 0x10c   :  { %1433 = vmatpush3.msra.mxu0 %v685_v61  ;;  %1468 = vmatpush3.msra.mxu1 %v717_v62  ;;  %v658_v62 = vrot.slane %v642_v55, %v629_v40  ;;  %vm661_vm8 = vcmp.eq.s32.totalorder %v654_v58, 1  ;;  %v1118_v55 = vld [vmem:[%s2461_s6 + $0xa8] sm:$0xff] }
 0x10d   :  { %1434 = vmatprep.subr.mxu0 %v700_v63  ;;  %1469 = vmatprep.subr.mxu1 %v732_v0  ;;  %v1150_v58 = vld [vmem:[%s2461_s6 + $0x1a8] sm:$0xff] }
 0x10e   :  { %1435 = vmatpush3.msra.mxu0 %v684_v1  ;;  %1470 = vmatpush3.msra.mxu1 %v716_v2  ;;  %vm662_vm15 = vcmp.eq.s32.totalorder %v658_v62, 1  ;;  %v1595_v1 = vmov 1.0   ;;  %v1143_v2 = vld [vmem:[%s2461_s6 + $0x170] sm:$0xff]  ;;  %v1149_v62 = vld [vmem:[%s2461_s6 + $0x1a0] sm:$0xff] }
 0x10f   :  { %1436 = vmatprep.subr.mxu0 %v699_v3  ;;  %1471 = vmatprep.subr.mxu1 %v731_v4  ;;  %v1126_v3 = vld [vmem:[%s2461_s6 + $0xe8] sm:$0xff] }
 0x110   :  { %1437 = vmatpush3.msra.mxu0 %v683_v5  ;;  %1472 = vmatpush3.msra.mxu1 %v715_v6  ;;  %v1158_v4 = vld [vmem:[%s2461_s6 + $0x1e8] sm:$0xff] }
 0x111   :  { %1438 = vmatprep.subr.mxu0 %v698_v7  ;;  %1473 = vmatprep.subr.mxu1 %v730_v9  ;;  %v1110_v5 = vld [vmem:[%s2461_s6 + $0x68] sm:$0xff]  ;;  %v1125_v7 = vld [vmem:[%s2461_s6 + $0xe0] sm:$0xff] }
 0x112   :  { %1439 = vmatpush3.msra.mxu0 %v682_v10  ;;  %1474 = vmatpush3.msra.mxu1 %v714_v11  ;;  %v1142_v6 = vld [vmem:[%s2461_s6 + $0x168] sm:$0xff]  ;;  %v1157_v9 = vld [vmem:[%s2461_s6 + $0x1e0] sm:$0xff] }
 0x113   :  { %1440 = vmatprep.subr.mxu0 %v697_v13  ;;  %1475 = vmatprep.subr.mxu1 %v729_v15  ;;  %v1109_v10 = vld [vmem:[%s2461_s6 + $0x60] sm:$0xff]  ;;  %v1124_v13 = vld [vmem:[%s2461_s6 + $0xd8] sm:$0xff] }
 0x114   :  { %1441 = vmatpush3.msra.mxu0 %v681_v16  ;;  %1476 = vmatpush3.msra.mxu1 %v713_v17  ;;  %v1141_v11 = vld [vmem:[%s2461_s6 + $0x160] sm:$0xff]  ;;  %v1156_v15 = vld [vmem:[%s2461_s6 + $0x1d8] sm:$0xff] }
 0x115   :  { %1442 = vmatprep.subr.mxu0 %v696_v19  ;;  %1477 = vmatprep.subr.mxu1 %v728_v21  ;;  %v1108_v16 = vld [vmem:[%s2461_s6 + $0x58] sm:$0xff]  ;;  %v1123_v19 = vld [vmem:[%s2461_s6 + $0xd0] sm:$0xff] }
 0x116   :  { %1443 = vmatpush3.msra.mxu0 %v680_v23  ;;  %1478 = vmatpush3.msra.mxu1 %v712_v30  ;;  %v1140_v17 = vld [vmem:[%s2461_s6 + $0x158] sm:$0xff]  ;;  %v1155_v21 = vld [vmem:[%s2461_s6 + $0x1d0] sm:$0xff] }
 0x117   :  { %1444 = vmatprep.subr.mxu0 %v695_v32  ;;  %1479 = vmatprep.subr.mxu1 %v727_v33  ;;  %v1107_v23 = vld [vmem:[%s2461_s6 + $0x50] sm:$0xff]  ;;  %v1122_v32 = vld [vmem:[%s2461_s6 + $0xc8] sm:$0xff] }
 0x118   :  { %1445 = vmatpush3.msra.mxu0 %v679_v34  ;;  %1480 = vmatpush3.msra.mxu1 %v711_v35  ;;  %v1139_v30 = vld [vmem:[%s2461_s6 + $0x150] sm:$0xff]  ;;  %v1154_v33 = vld [vmem:[%s2461_s6 + $0x1c8] sm:$0xff] }
 0x119   :  { %926 = vmatprep.subr.mxu0 %v1872_v25  ;;  %997 = vmatprep.subr.mxu1 %v1840_v18  ;;  %v630_v25 = vrot.slane %v626_v42, %v629_v40  ;;  %v633_v18 = vsub.s32 3, %v1653_v8  ;;  %v1106_v34 = vld [vmem:[%s2461_s6 + $0x48] sm:$0xff] }
 0x11a   :  { %v1138_v35 = vld [vmem:[%s2461_s6 + $0x148] sm:$0xff] }
 0x11b   :  { %v646_v53 = vrot.slane %v630_v25, %v629_v40  ;;  %v634_v54 = vrot.slane %v626_v42, %v633_v18  ;;  %v1120_v42 = vld [vmem:[%s2461_s6 + $0xb8] sm:$0xff] }
 0x11c   :  { %v1104_v25 = vld [vmem:[%s2461_s6 + $0x38] sm:$0xff] }
 0x11d   :  { %vm659_vm3 = vcmp.eq.s32.totalorder %v646_v53, 1  ;;  %v650_v59 = vrot.slane %v634_v54, %v629_v40  ;;  %v1105_v40 = vld [vmem:[%s2461_s6 + $0x40] sm:$0xff]  ;;  %v1136_v18 = vld [vmem:[%s2461_s6 + $0x138] sm:$0xff]  ;;  %v1103_v53 = vld [vmem:[%s2461_s6 + $0x30] sm:$0xff] }
 0x11e   :  { %v1135_v54 = vld [vmem:[%s2461_s6 + $0x130] sm:$0xff] }
 0x11f   :  { %vm660_vm10 = vcmp.eq.s32.totalorder %v650_v59, 1  ;;  %v1102_v59 = vld [vmem:[%s2461_s6 + $0x28] sm:$0xff] }
 0x172   :  { %v1376_v36 = vpop.f32.mrf.mxu0 }
 0x174   :  { %v1377_v37 = vpop.f32.mrf.mxu0 }
 0x175   :  { %v2197_v38 = vadd.f32 %v1377_v37, %v1376_v36  ;;  %v1121_v36 = vld [vmem:[%s2461_s6 + $0xc0] sm:$0xff] }
 0x176   :  { %v1153_v37 = vld [vmem:[%s2461_s6 + $0x1c0] sm:$0xff] }
 0x1af   :  { %v2209_v46 = vpop.f32.mrf.mxu0  ;;  %v2211_v51 = vpop.f32.mrf.mxu1 }
 0x1b1   :  { %v2213_v56 = vpop.f32.mrf.mxu0  ;;  %v2215_v57 = vpop.f32.mrf.mxu1 }
 0x1b8   :  { %v540_v60 = vpop.f32.mrf.mxu0  ;;  %v611_v61 = vpop.f32.mrf.mxu1 }
 0x1b9   :  { %vm618_vm4 = vcmp.lt.f32.partialorder %v540_v60, %v2209_v46  ;;  %vm622_vm5 = vcmp.eq.f32.partialorder %v540_v60, %v2209_v46  ;;  %vm624_vm7 = vcmp.eq.f32.partialorder %v611_v61, %v2211_v51  ;;  %v1134_v60 = vld [vmem:[%s2461_s6 + $0x128] sm:$0xff] }
 0x1ba   :  { %vm663_vm6 = vmand %vm622_vm5, %vm659_vm3  ;;  %v542_v63 = vpop.f32.mrf.mxu0  ;;  %v613_v0 = vpop.f32.mrf.mxu1  ;;  %vm620_vm3 = vcmp.lt.f32.partialorder %v611_v61, %v2211_v51  ;;  %v1117_v61 = vld [vmem:[%s2461_s6 + $0xa0] sm:$0xff] }
 0x1bb   :  { %vm623_vm9 = vcmp.eq.f32.partialorder %v542_v63, %v2213_v56  ;;  %vm667_vm11 = vmor %vm618_vm4, %vm663_vm6  ;;  %vm619_vm12 = vcmp.lt.f32.partialorder %v542_v63, %v2213_v56  ;;  %vm625_vm14 = vcmp.eq.f32.partialorder %v613_v0, %v2215_v57  ;;  %vm621_vm2 = vcmp.lt.f32.partialorder %v613_v0, %v2215_v57  ;;  %v1101_v63 = vld [vmem:[%s2461_s6 + $0x20] sm:$0xff] }
 0x1bc   :  { %vm665_vm13 = vmand %vm624_vm7, %vm661_vm8  ;;  %v1133_v0 = vld [vmem:[%s2461_s6 + $0x120] sm:$0xff] }
 0x1bd   :  { %vm664_vm0 = vmand %vm623_vm9, %vm660_vm10 }
 0x1be   :  { %vm668_vm5 = vmor %vm619_vm12, %vm664_vm0  ;;  %vm1305_vm12 = vcmask 15360  }
 0x1bf   :  { %vm666_vm1 = vmand %vm625_vm14, %vm662_vm15  ;;  %1334 = vmatprep.mubr.msk.f32.mxu0 %vm668_vm5, %v1595_v1 }
 0x1c0   :  { %vm670_vm4 = vmor %vm621_vm2, %vm666_vm1  ;;  %1335 = vmatmul.mubr.msk.f32.vlgmr.msra.gmra.mxu0 %vm667_vm11, %v1595_v1  ;;  %vm2464_vm1 = vcmask 261120  }
 0x1c1   :  { %vm669_vm6 = vmor %vm620_vm3, %vm665_vm13  ;;  %1336 = vmatprep.mubr.msk.f32.mxu1 %vm670_vm4, %v1595_v1  ;;  %927 = vmatpush1.msra.mxu0 %v1911_v44  ;;  %vm1309_vm13 = vcmask 25600  }
 0x1c2   :  { %1337 = vmatmul.mubr.msk.f32.vlgmr.msra.gmra.mxu1 %vm669_vm6, %v1595_v1  ;;  %928 = vmatprep.subr.mxu0 %v1917_v12  ;;  %vm2465_vm7 = vmmov %vm2464_vm1  ;;  %v1116_v1 = vld [vmem:[%s2461_s6 + $0x98] sm:$0xff] }
 0x1c3   :  { %998 = vmatpush1.msra.mxu1 %v1849_v20  ;;  %929 = vmatpush1.msra.mxu0 %v1922_v14  ;;  %v1128_v20 = vld [vmem:[%s2461_s6 + $0xf8] sm:$0xff] }
 0x1c4   :  { %999 = vmatprep.subr.mxu1 %v1858_v22  ;;  %930 = vmatprep.subr.mxu0 %v1928_v47  ;;  %v1160_v22 = vld [vmem:[%s2461_s6 + $0x1f8] sm:$0xff] }
 0x1c5   :  { %1000 = vmatpush1.msra.mxu1 %v1867_v24  ;;  %931 = vmatpush1.msra.mxu0 %v1935_v48  ;;  %v1144_v47 = vld [vmem:[%s2461_s6 + $0x178] sm:$0xff]  ;;  %v1127_v48 = vld [vmem:[%s2461_s6 + $0xf0] sm:$0xff] }
 0x1c6   :  { %1001 = vmatprep.subr.mxu1 %v1879_v26  ;;  %932 = vmatprep.subr.mxu0 %v1941_v49  ;;  %v1159_v49 = vld [vmem:[%s2461_s6 + $0x1f0] sm:$0xff] }
 0x1c7   :  { %1002 = vmatpush1.msra.mxu1 %v1885_v27  ;;  %933 = vmatpush1.msra.mxu0 %v1947_v50  ;;  %v1111_v50 = vld [vmem:[%s2461_s6 + $0x70] sm:$0xff] }
 0x1c8   :  { %1003 = vmatprep.subr.mxu1 %v1891_v28  ;;  %966 = vmatprep.mubr.f32.mxu0 %v1592_v31 }
 0x1c9   :  { %1004 = vmatpush1.msra.mxu1 %v1897_v29  ;;  %1037 = vmatprep.mubr.f32.mxu1 %v1592_v31  ;;  %v1112_v29 = vld [vmem:[%s2461_s6 + $0x78] sm:$0xff] }
 0x1ca   :  { %1484 = vmatprep.subr.mxu0 %v1128_v20  ;;  %1519 = vmatprep.subr.mxu1 %v1160_v22  ;;  %v1148_v20 = vld [vmem:[%s2461_s6 + $0x198] sm:$0xff] }
 0x1cb   :  { %v1100_v22 = vld [vmem:[%s2461_s6 + $0x18] sm:$0xff] }
 0x280   :  { %v1446_v24 = vpop.f32.mrf.mxu0 }
 0x282   :  { %v1481_v26 = vpop.f32.mrf.mxu1  ;;  %v1447_v27 = vpop.f32.mrf.mxu0 }
 0x283   :  { %v1448_v28 = vadd.f32 %v1447_v27, %v1446_v24  ;;  %v1132_v24 = vld [vmem:[%s2461_s6 + $0x118] sm:$0xff]  ;;  %v1147_v27 = vld [vmem:[%s2461_s6 + $0x190] sm:$0xff] }
 0x284   :  { %v1482_v44 = vpop.f32.mrf.mxu1 }
 0x285   :  { %v1483_v12 = vadd.f32 %v1482_v44, %v1481_v26  ;;  %v1115_v26 = vld [vmem:[%s2461_s6 + $0x90] sm:$0xff] }
 0x286   :  { %v1131_v44 = vld [vmem:[%s2461_s6 + $0x110] sm:$0xff] }
 0x287   :  { %v880_v14 = vadd.f32 %v1483_v12, %v1448_v28  ;;  %v1099_v28 = vld [vmem:[%s2461_s6 + $0x10] sm:$0xff]  ;;  %v1114_v12 = vld [vmem:[%s2461_s6 + $0x88] sm:$0xff] }
 0x289   :  { %1338 = vmatmul.mubr.msk.f32.vlgmr.msra.gmra.mxu0 %vm2464_vm1, %v880_v14  ;;  %1339 = vmatmul.mubr.msk.f32.vlgmr.msra.gmra.mxu1 %vm2465_vm7, %v880_v14  ;;  %v1146_v14 = vld [vmem:[%s2461_s6 + $0x188] sm:$0xff] }
 0x28a   :  { %1485 = vmatpush3.msra.mxu0 %v1112_v29  ;;  %1520 = vmatpush3.msra.mxu1 %v1144_v47  ;;  %v1098_v29 = vld [vmem:[%s2461_s6 + $0x8] sm:$0xff] }
 0x28b   :  { %1486 = vmatprep.subr.mxu0 %v1127_v48  ;;  %1521 = vmatprep.subr.mxu1 %v1159_v49  ;;  %v1130_v47 = vld [vmem:[%s2461_s6 + $0x108] sm:$0xff]  ;;  %v1113_v48 = vld [vmem:[%s2461_s6 + $0x80] sm:$0xff] }
 0x28c   :  { %1487 = vmatpush3.msra.mxu0 %v1111_v50  ;;  %1522 = vmatpush3.msra.mxu1 %v1143_v2  ;;  %v1145_v49 = vld [vmem:[%s2461_s6 + $0x180] sm:$0xff] }
 0x28d   :  { %1488 = vmatprep.subr.mxu0 %v1126_v3  ;;  %1523 = vmatprep.subr.mxu1 %v1158_v4  ;;  %v1097_v50 = vld [vmem:[%s2461_s6] sm:$0xff]  ;;  %v1047_v3 = vsub.s32 0, %v1653_v8  ;;  %v1055_v4 = vsub.s32 4, %v1653_v8 }
 0x28e   :  { %1489 = vmatpush3.msra.mxu0 %v1110_v5  ;;  %1524 = vmatpush3.msra.mxu1 %v1142_v6  ;;  %v1129_v2 = vld [vmem:[%s2461_s6 + $0x100] sm:$0xff]  ;;  %v1051_v5 = vsub.s32 2, %v1653_v8  ;;  %v1059_v6 = vsub.s32 6, %v1653_v8  ;;  %s1596_s6 = smov 2  }
 0x28f   :  { %1490 = vmatprep.subr.mxu0 %v1125_v7  ;;  %1525 = vmatprep.subr.mxu1 %v1157_v9  ;;  %v1048_v7 = vrot.slane %v2202_v39, %v1047_v3  ;;  %v1056_v9 = vrot.slane %v2202_v39, %v1055_v4 }
 0x290   :  { %1491 = vmatpush3.msra.mxu0 %v1109_v10  ;;  %1526 = vmatpush3.msra.mxu1 %v1141_v11  ;;  %v1052_v10 = vrot.slane %v2202_v39, %v1051_v5  ;;  %v1060_v11 = vrot.slane %v2202_v39, %v1059_v6 }
 0x291   :  { %1492 = vmatprep.subr.mxu0 %v1124_v13  ;;  %1527 = vmatprep.subr.mxu1 %v1156_v15  ;;  %v1068_v13 = vrot.slane %v1048_v7, %v1047_v3  ;;  %v1076_v15 = vrot.slane %v1056_v9, %v1047_v3 }
 0x292   :  { %1493 = vmatpush3.msra.mxu0 %v1108_v16  ;;  %1528 = vmatpush3.msra.mxu1 %v1140_v17  ;;  %v1072_v16 = vrot.slane %v1052_v10, %v1047_v3  ;;  %v1080_v17 = vrot.slane %v1060_v11, %v1047_v3 }
 0x293   :  { %1494 = vmatprep.subr.mxu0 %v1123_v19  ;;  %1529 = vmatprep.subr.mxu1 %v1155_v21 }
 0x294   :  { %1495 = vmatpush3.msra.mxu0 %v1107_v23  ;;  %1530 = vmatpush3.msra.mxu1 %v1139_v30 }
 0x295   :  { %1496 = vmatprep.subr.mxu0 %v1122_v32  ;;  %1531 = vmatprep.subr.mxu1 %v1154_v33 }
 0x296   :  { %1497 = vmatpush3.msra.mxu0 %v1106_v34  ;;  %1532 = vmatpush3.msra.mxu1 %v1138_v35 }
 0x297   :  { %1498 = vmatprep.subr.mxu0 %v1121_v36  ;;  %1533 = vmatprep.subr.mxu1 %v1153_v37 }
 0x298   :  { %1499 = vmatpush3.msra.mxu0 %v1105_v40  ;;  %1534 = vmatpush3.msra.mxu1 %v1137_v41 }
 0x299   :  { %1500 = vmatprep.subr.mxu0 %v1120_v42  ;;  %1535 = vmatprep.subr.mxu1 %v1152_v43 }
 0x29a   :  { %1501 = vmatpush3.msra.mxu0 %v1104_v25  ;;  %1536 = vmatpush3.msra.mxu1 %v1136_v18 }
 0x29b   :  { %1502 = vmatprep.subr.mxu0 %v1119_v45  ;;  %1537 = vmatprep.subr.mxu1 %v1151_v52 }
 0x29c   :  { %1503 = vmatpush3.msra.mxu0 %v1103_v53  ;;  %1538 = vmatpush3.msra.mxu1 %v1135_v54 }
 0x29d   :  { %1504 = vmatprep.subr.mxu0 %v1118_v55  ;;  %1539 = vmatprep.subr.mxu1 %v1150_v58 }
 0x29e   :  { %1505 = vmatpush3.msra.mxu0 %v1102_v59  ;;  %1540 = vmatpush3.msra.mxu1 %v1134_v60 }
 0x29f   :  { %1506 = vmatprep.subr.mxu0 %v1117_v61  ;;  %1541 = vmatprep.subr.mxu1 %v1149_v62 }
 0x2a0   :  { %1507 = vmatpush3.msra.mxu0 %v1101_v63  ;;  %1542 = vmatpush3.msra.mxu1 %v1133_v0 }
 0x2a1   :  { %1508 = vmatprep.subr.mxu0 %v1116_v1  ;;  %1543 = vmatprep.subr.mxu1 %v1148_v20 }
 0x2a2   :  { %1509 = vmatpush3.msra.mxu0 %v1100_v22  ;;  %1544 = vmatpush3.msra.mxu1 %v1132_v24 }
 0x2a3   :  { %1510 = vmatprep.subr.mxu0 %v1115_v26  ;;  %1545 = vmatprep.subr.mxu1 %v1147_v27 }
 0x2a4   :  { %1511 = vmatpush3.msra.mxu0 %v1099_v28  ;;  %1546 = vmatpush3.msra.mxu1 %v1131_v44 }
 0x2a5   :  { %1512 = vmatprep.subr.mxu0 %v1114_v12  ;;  %1547 = vmatprep.subr.mxu1 %v1146_v14 }
 0x2a6   :  { %1513 = vmatpush3.msra.mxu0 %v1098_v29  ;;  %1548 = vmatpush3.msra.mxu1 %v1130_v47 }
 0x2a7   :  { %1514 = vmatprep.subr.mxu0 %v1113_v48  ;;  %1549 = vmatprep.subr.mxu1 %v1145_v49 }
 0x2a8   :  { %1515 = vmatpush3.msra.mxu0 %v1097_v50  ;;  %1550 = vmatpush3.msra.mxu1 %v1129_v2 }
 0x349   :  { %v968_v19 = vpop.f32.mrf.mxu0  ;;  %v1039_v21 = vpop.f32.mrf.mxu1 }
 0x34a   :  { %vm1081_vm8 = vcmp.eq.f32.partialorder %v968_v19, %v1068_v13  ;;  %vm1083_vm9 = vcmp.eq.f32.partialorder %v1039_v21, %v1076_v15 }
 0x34b   :  { %v970_v23 = vpop.f32.mrf.mxu0  ;;  %v1041_v30 = vpop.f32.mrf.mxu1  ;;  %v1340_v8 = vsel %vm1081_vm8, 1.0, %v1592_v31  ;;  %v1342_v32 = vsel %vm1083_vm9, 1.0, %v1592_v31 }
 0x34c   :  { %vm1082_vm10 = vcmp.eq.f32.partialorder %v970_v23, %v1072_v16  ;;  %vm1084_vm11 = vcmp.eq.f32.partialorder %v1041_v30, %v1080_v17  ;;  %v1093_v36 = vmul.f32 %v1340_v8, %v2209_v46  ;;  %v1095_v37 = vmul.f32 %v1342_v32, %v2211_v51 }
 0x34d   :  { %v1341_v33 = vsel %vm1082_vm10, 1.0, %v1592_v31  ;;  %v1343_v39 = vsel %vm1084_vm11, 1.0, %v1592_v31  ;;  %v72_v31 = vpop.xlane.xlu0 %71 }
 0x34e   :  { %v1094_v34 = vmul.f32 %v1341_v33, %v2213_v56  ;;  %v1096_v35 = vmul.f32 %v1343_v39, %v2215_v57  ;;  %1567 = vrcp.f32 %v72_v31 }
 0x350   :  { %1225 = vmatprep.mubr.f32.mxu0 %v1094_v34  ;;  %1295 = vmatprep.mubr.f32.mxu1 %v1096_v35 }
 0x351   :  { %1226 = vmatmul.mubr.f32.vlgmr.msra.gmra.mxu0 %v1093_v36  ;;  %1296 = vmatmul.mubr.f32.vlgmr.msra.gmra.mxu1 %v1095_v37 }
 0x35b   :  { %v1568_v56 = vpop.eup %1567 }
 0x35c   :  { %v176_v46 = vmul.f32 %v1568_v56, %v2197_v38 }
 0x411   :  { %v1516_v40 = vpop.f32.mrf.mxu0  ;;  %v1551_v41 = vpop.f32.mrf.mxu1 }
 0x413   :  { %v1517_v42 = vpop.f32.mrf.mxu0  ;;  %v1552_v43 = vpop.f32.mrf.mxu1 }
 0x414   :  { %v1518_v25 = vadd.f32 %v1517_v42, %v1516_v40  ;;  %v1553_v18 = vadd.f32 %v1552_v43, %v1551_v41 }
 0x416   :  { %v1298_v45 = vadd.f32 %v1553_v18, %v1518_v25 }
 0x418   :  { %1302 = vrot.lane.b32.xlu1 %v1298_v45, %s1596_s6 }
 0x48a   :  { %v1303_v51 = vpop.permute.xlu1 %1302 }
 0x48b   :  { %v1306_v57 = vsel %vm1305_vm12, %v176_v46, %v1303_v51 }
 0x48c   :  { %v1307_v52 = vmax.f32 %v1306_v57, 0.0 }
 0x48e   :  { %v1308_v53 = vmin.f32 %v1307_v52, 1.0 }
 0x490   :  { %1310 = vst.msk [vmem:[#allocation2] sm:$0x3] %vm1309_vm13, %v1308_v53 }
 0x491   :  { %1580 = shalt.err (!%p1577_p4)
}
 0x492   :  { %1320 = dma.vmem_to_hbm [thread:$0]  %s1318_s3, 32, %s2462_s7, [#allocation3]  }
 0x493   :  { %1589 = dma.done.wait [#allocation3], 32  }
 0x494   :  { %1590 = vsyncadd [#allocation3], 4294967264 }
 0x495   :  { %1324 = vsyncpa [#allocation3], 1 }

</bundles_post_ra>
